<compile_context>
chip_gen: v6e
topology: v6e:2x2x1
jax: 0.10.0
libtpu: 0.0.40
codegen_flags: <defaults>
</compile_context>

<pallas_src>
import functools
import math

import jax
import jax.numpy as jnp
from jax.experimental import pallas as pl
from jax.experimental.pallas import tpu as pltpu

LANE = 128


def _round_up(x, m):
    return ((x + m - 1) // m) * m


def _cdiv(a, b):
    return (a + b - 1) // b


def _clf_kernel(x_ref, w_enc_rows_ref, b_enc_ref, w_fc_ref, b_fc_ref, out_ref,
                acc_ref, *, C, b_tile, hw_total, rows_total, hw_ragged,
                rem_cols, row_ragged):
    """Fused streaming mean-pool -> encoder projection -> fc -> sigmoid.

    Grid: (batch blocks [parallel], hw blocks [arbitrary, reduction, LAST]).
    NOTE: acc_ref init/finalize correctness requires the hw (reduction) axis to
    be the innermost (last) grid dimension.

    x_ref          : [r_tile, hw_tile]  input dtype  (rows = batch*channel)
    w_enc_rows_ref : [r_tile, IN_PAD]   f32  (w_enc tiled: row r -> channel r % C)
    b_enc_ref      : [1, IN_PAD]        f32
    w_fc_ref       : [IN_PAD, OUT_PAD]  f32  (fc.weight^T, zero-padded)
    b_fc_ref       : [1, OUT_PAD]       f32
    out_ref        : [b_tile, OUT_PAD]  f32  (resident across the hw axis)
    acc_ref        : [r_tile, 1]        f32  per-row running spatial sums
    """
    h = pl.program_id(1)
    nh = pl.num_programs(1)
    r_tile = acc_ref.shape[0]

    @pl.when(h == 0)
    def _init():
        acc_ref[...] = jnp.zeros_like(acc_ref)

    # Stream x in its native dtype (bf16 OK); accumulate in f32.
    x = x_ref[...].astype(jnp.float32)                       # [r_tile, hw_tile]

    if hw_ragged:
        @pl.when(h == nh - 1)
        def _accumulate_tail():
            # Only the last HW block has invalid tail columns; mask them to 0
            # (select also kills any stale NaNs in the VMEM buffer tail).
            col = jax.lax.broadcasted_iota(jnp.int32, x.shape, 1)
            xm = jnp.where(col < rem_cols, x, 0.0)
            acc_ref[...] = acc_ref[...] + jnp.sum(xm, axis=-1, keepdims=True)

        @pl.when(h < nh - 1)
        def _accumulate_body():
            acc_ref[...] = acc_ref[...] + jnp.sum(x, axis=-1, keepdims=True)
    else:
        acc_ref[...] = acc_ref[...] + jnp.sum(x, axis=-1, keepdims=True)

    @pl.when(h == nh - 1)
    def _finalize():
        row_sums = acc_ref[...]                               # [r_tile, 1]
        if row_ragged:
            # Rows beyond B*C in the last batch block hold stale data; zero
            # them so they cannot contaminate valid outputs.
            ridx = (pl.program_id(0) * r_tile
                    + jax.lax.broadcasted_iota(jnp.int32, (r_tile, 1), 0))
            row_sums = jnp.where(ridx < rows_total, row_sums, 0.0)

        # encoder projection: emb[b,:] = sum_c pooled[b,c] * w_enc[c,:] + b_enc
        # done as sel @ (pooled_row * w_enc_row) to avoid in-kernel reshapes.
        pooled_w = (row_sums * (1.0 / hw_total)) * w_enc_rows_ref[...]
        b_idx = jax.lax.broadcasted_iota(jnp.int32, (b_tile, r_tile), 0)
        r_idx = jax.lax.broadcasted_iota(jnp.int32, (b_tile, r_tile), 1)
        sel = jnp.where((r_idx >= b_idx * C) & (r_idx < (b_idx + 1) * C),
                        1.0, 0.0).astype(jnp.float32)
        emb = jnp.dot(sel, pooled_w,
                      preferred_element_type=jnp.float32) + b_enc_ref[...]
        logits = jnp.dot(emb, w_fc_ref[...],
                         preferred_element_type=jnp.float32) + b_fc_ref[...]
        out_ref[...] = jax.nn.sigmoid(logits)                 # act_fn = 'sigmoid'


def _choose_b_tile(B, C, b_tile_max):
    """Batches per block: rows (b_tile*C) always a multiple of 8; when the
    batch axis has >1 block, b_tile itself is a multiple of 8 (8-aligned output
    blocks) and we keep >= 2 blocks so both v7x TensorCores get work."""
    base_b = 8 // math.gcd(8, C)          # min batches/block s.t. rows % 8 == 0
    if B <= base_b:
        return base_b                     # single block (block rows == array rows)
    bt = 8
    while bt * 2 <= b_tile_max and _cdiv(B, bt * 2) >= 2:
        bt *= 2
    return bt


@functools.partial(jax.jit, static_argnames=("hw_tile", "b_tile_max"))
def clap_audio_classifier_forward(x_nchw, w_enc, b_enc, w_fc, b_fc,
                                  hw_tile=None, b_tile_max=32):
    """x_nchw: [B, C, H, W] spectrogram-like input (f32 or bf16)."""
    B, C, H, W = x_nchw.shape
    in_dim = w_enc.shape[1]
    out_dim = w_fc.shape[1]
    HW = H * W

    # ---- lane-dense (128-wide) zero-padded head parameters ------------------
    in_pad = _round_up(in_dim, LANE)
    out_pad = _round_up(out_dim, LANE)

    # ---- batch tiling (parallel grid axis) ----------------------------------
    b_tile = _choose_b_tile(B, C, max(8, b_tile_max))
    r_tile = b_tile * C                   # rows per x block, multiple of 8
    nb = _cdiv(B, b_tile)

    # ---- HW tiling (reduction axis, last in grid); VMEM-aware ---------------
    if hw_tile is None:
        target_bytes = 12 * 1024 * 1024   # per x block (~24 MiB double-buffered)
        hw_tile = max(LANE, (target_bytes // (r_tile * 4)) // LANE * LANE)
    elif hw_tile % LANE != 0:
        raise ValueError(f"hw_tile must be a multiple of {LANE}, got {hw_tile}")
    hw_tile = min(hw_tile, _round_up(HW, LANE))
    nh = _cdiv(HW, hw_tile)

    hw_ragged = (HW % hw_tile) != 0
    rem_cols = HW - (nh - 1) * hw_tile    # valid columns in the last HW block
    row_ragged = (B % b_tile) != 0
    rows_total = B * C

    # Free reshape (no HBM copy, no padding): rows = batch*channel.
    x_flat = x_nchw.reshape(B * C, HW)

    f32 = jnp.float32
    w_enc_p = jnp.zeros((C, in_pad), f32).at[:, :in_dim].set(w_enc.astype(f32))
    w_enc_rows = jnp.tile(w_enc_p, (b_tile, 1))               # [r_tile, in_pad]
    b_enc_p = jnp.zeros((1, in_pad), f32).at[0, :in_dim].set(b_enc.astype(f32))
    w_fc_p = jnp.zeros((in_pad, out_pad), f32).at[:in_dim, :out_dim].set(w_fc.astype(f32))
    b_fc_p = jnp.zeros((1, out_pad), f32).at[0, :out_dim].set(b_fc.astype(f32))

    kernel = functools.partial(
        _clf_kernel, C=C, b_tile=b_tile, hw_total=HW, rows_total=rows_total,
        hw_ragged=hw_ragged, rem_cols=rem_cols, row_ragged=row_ragged)

    out = pl.pallas_call(
        kernel,
        out_shape=jax.ShapeDtypeStruct((nb * b_tile, out_pad), f32),
        grid=(nb, nh),
        in_specs=[
            pl.BlockSpec((r_tile, hw_tile), lambda b, h: (b, h)),
            pl.BlockSpec((r_tile, in_pad), lambda b, h: (0, 0)),
            pl.BlockSpec((1, in_pad), lambda b, h: (0, 0)),
            pl.BlockSpec((in_pad, out_pad), lambda b, h: (0, 0)),
            pl.BlockSpec((1, out_pad), lambda b, h: (0, 0)),
        ],
        # Output block is constant along the hw (reduction) axis -> resident
        # accumulator-style output, written only at the last hw step.
        out_specs=pl.BlockSpec((b_tile, out_pad), lambda b, h: (b, 0)),
        scratch_shapes=[pltpu.VMEM((r_tile, 1), jnp.float32)],
        compiler_params=pltpu.CompilerParams(
            dimension_semantics=("parallel", "arbitrary"),
            vmem_limit_bytes=48 * 1024 * 1024,
        ),
    )(x_flat, w_enc_rows, b_enc_p, w_fc_p, b_fc_p)

    return out[:B, :out_dim]


def _reference(x_nchw, w_enc, b_enc, w_fc, b_fc):
    B, C, H, W = x_nchw.shape
    pooled = jnp.mean(x_nchw.reshape(B, C, H * W).astype(jnp.float32), axis=-1)
    emb = pooled @ w_enc + b_enc
    logits = emb @ w_fc + b_fc
    return jax.nn.sigmoid(logits)


if __name__ == "__main__":
    # classifier config (synthetic, matches module's __init__ shapes)
    B, C, H, W = 2, 4, 16, 16
    IN_DIM, OUT_DIM = 32, 8   # config['classifier']['in_dim'/'out_dim']

    key = jax.random.PRNGKey(0)
    kx, k1, k2, k3, k4 = jax.random.split(key, 5)

    x = jax.random.normal(kx, (B, C, H, W), dtype=jnp.float32)
    # synthetic audio-encoder projection params
    w_enc = jax.random.normal(k1, (C, IN_DIM), dtype=jnp.float32) * 0.1
    b_enc = jax.random.normal(k2, (IN_DIM,), dtype=jnp.float32) * 0.1
    # fc = nn.Linear(in_dim, out_dim): weight stored transposed [in_dim, out_dim]
    w_fc = jax.random.normal(k3, (IN_DIM, OUT_DIM), dtype=jnp.float32) * 0.1
    b_fc = jax.random.normal(k4, (OUT_DIM,), dtype=jnp.float32) * 0.1

    # hw_tile=128 -> grid (1, 2): exercises the streaming-reduction path even
    # at the tiny demo shapes (auto sizing would pick a single HW block here).
    out = clap_audio_classifier_forward(x, w_enc, b_enc, w_fc, b_fc, hw_tile=128)
    out = jax.block_until_ready(out)

    ref = _reference(x, w_enc, b_enc, w_fc, b_fc)
    assert out.shape == (B, OUT_DIM), out.shape
    assert jnp.allclose(out, ref, atol=1e-5, rtol=1e-5), \
        float(jnp.max(jnp.abs(out - ref)))
    print("KERNEL_OK")
</pallas_src>

<mosaic_0001>
module attributes {stable_mosaic.version = 11 : i64} {
  func.func @_clf_kernel(%arg0: i32, %arg1: i32, %arg2: memref<8x128xf32, #tpu.memory_space<vmem>>, %arg3: memref<8x128xf32, #tpu.memory_space<vmem>>, %arg4: memref<1x128xf32, #tpu.memory_space<vmem>>, %arg5: memref<128x128xf32, #tpu.memory_space<vmem>>, %arg6: memref<1x128xf32, #tpu.memory_space<vmem>>, %arg7: memref<2x128xf32, #tpu.memory_space<vmem>>, %arg8: memref<8x1xf32, #tpu.memory_space<vmem>>) attributes {dimension_semantics = [#tpu.dimension_semantics<parallel>, #tpu.dimension_semantics<arbitrary>], iteration_bounds = array<i64: 1, 2>, scalar_prefetch = 0 : i64, scratch_operands = 1 : i64, tpu.core_type = #tpu.core_type<tc>, window_params = [{transform_indices = @transform_0, window_bounds = array<i64: 8, 128>}, {pipeline_mode = #tpu.pipeline_mode<synchronous>, transform_indices = @transform_1, window_bounds = array<i64: 8, 128>}, {pipeline_mode = #tpu.pipeline_mode<synchronous>, transform_indices = @transform_2, window_bounds = array<i64: 1, 128>}, {pipeline_mode = #tpu.pipeline_mode<synchronous>, transform_indices = @transform_3, window_bounds = array<i64: 128, 128>}, {pipeline_mode = #tpu.pipeline_mode<synchronous>, transform_indices = @transform_4, window_bounds = array<i64: 1, 128>}, {transform_indices = @transform_5, window_bounds = array<i64: 2, 128>}]} {
    %c0_i32 = arith.constant 0 : i32
    %0 = arith.cmpi eq, %arg1, %c0_i32 : i32
    %1 = arith.extui %0 : i1 to i32
    %c0_i32_0 = arith.constant 0 : i32
    %2 = arith.cmpi ne, %1, %c0_i32_0 : i32
    scf.if %2 {
      %cst_7 = arith.constant 0.000000e+00 : f32
      %12 = vector.broadcast %cst_7 : f32 to vector<8x1xf32>
      %c0_8 = arith.constant 0 : index
      %c0_9 = arith.constant 0 : index
      %13 = vector.load %arg8[%c0_8, %c0_9] : memref<8x1xf32, #tpu.memory_space<vmem>>, vector<8x1xf32>
      tpu.vector_store %arg8[%c0_8, %c0_9], %12 {strides = array<i32>} : memref<8x1xf32, #tpu.memory_space<vmem>>, vector<8x1xf32>,
    } else {
    }
    %c0 = arith.constant 0 : index
    %c0_1 = arith.constant 0 : index
    %3 = vector.load %arg2[%c0, %c0_1] : memref<8x128xf32, #tpu.memory_space<vmem>>, vector<8x128xf32>
    %c0_2 = arith.constant 0 : index
    %c0_3 = arith.constant 0 : index
    %4 = vector.load %arg8[%c0_2, %c0_3] : memref<8x1xf32, #tpu.memory_space<vmem>>, vector<8x1xf32>
    %cst = arith.constant dense<0.000000e+00> : vector<8xf32>
    %5 = vector.multi_reduction <add>, %3, %cst [1] : vector<8x128xf32> to vector<8xf32>
    %6 = vector.shape_cast %5 : vector<8xf32> to vector<8x1xf32>
    %7 = arith.addf %4, %6 : vector<8x1xf32>
    %c0_4 = arith.constant 0 : index
    %c0_5 = arith.constant 0 : index
    %8 = vector.load %arg8[%c0_4, %c0_5] : memref<8x1xf32, #tpu.memory_space<vmem>>, vector<8x1xf32>
    tpu.vector_store %arg8[%c0_4, %c0_5], %7 {strides = array<i32>} : memref<8x1xf32, #tpu.memory_space<vmem>>, vector<8x1xf32>,
    %c1_i32 = arith.constant 1 : i32
    %9 = arith.cmpi eq, %arg1, %c1_i32 : i32
    %10 = arith.extui %9 : i1 to i32
    %c0_i32_6 = arith.constant 0 : i32
    %11 = arith.cmpi ne, %10, %c0_i32_6 : i32
    scf.if %11 {
      %c0_7 = arith.constant 0 : index
      %c0_8 = arith.constant 0 : index
      %12 = vector.load %arg8[%c0_7, %c0_8] : memref<8x1xf32, #tpu.memory_space<vmem>>, vector<8x1xf32>
      %cst_9 = arith.constant 3.906250e-03 : f32
      %13 = vector.broadcast %cst_9 : f32 to vector<8x1xf32>
      %14 = arith.mulf %12, %13 : vector<8x1xf32>
      %c0_10 = arith.constant 0 : index
      %c0_11 = arith.constant 0 : index
      %15 = vector.load %arg3[%c0_10, %c0_11] : memref<8x128xf32, #tpu.memory_space<vmem>>, vector<8x128xf32>
      %16 = vector.broadcast %14 : vector<8x1xf32> to vector<8x128xf32>
      %17 = arith.mulf %16, %15 : vector<8x128xf32>
      %18 = tpu.iota {dimensions = array<i32: 0>} : vector<2x8xi32>
      %19 = tpu.iota {dimensions = array<i32: 1>} : vector<2x8xi32>
      %c4_i32 = arith.constant 4 : i32
      %20 = vector.broadcast %c4_i32 : i32 to vector<2x8xi32>
      %21 = arith.muli %18, %20 : vector<2x8xi32>
      %22 = arith.cmpi sge, %19, %21 : vector<2x8xi32>
      %c1_i32_12 = arith.constant 1 : i32
      %23 = vector.broadcast %c1_i32_12 : i32 to vector<2x8xi32>
      %24 = arith.addi %18, %23 : vector<2x8xi32>
      %c4_i32_13 = arith.constant 4 : i32
      %25 = vector.broadcast %c4_i32_13 : i32 to vector<2x8xi32>
      %26 = arith.muli %24, %25 : vector<2x8xi32>
      %27 = arith.cmpi slt, %19, %26 : vector<2x8xi32>
      %28 = arith.andi %22, %27 : vector<2x8xi1>
      %cst_14 = arith.constant 1.000000e+00 : f32
      %cst_15 = arith.constant 0.000000e+00 : f32
      %29 = vector.broadcast %cst_14 : f32 to vector<2x8xf32>
      %30 = vector.broadcast %cst_15 : f32 to vector<2x8xf32>
      %31 = arith.select %28, %29, %30 : vector<2x8xi1>, vector<2x8xf32>
      %cst_16 = arith.constant dense<0.000000e+00> : vector<2x128xf32>
      %32 = tpu.matmul %31, %17, %cst_16 {dimension_numbers = #tpu.dot_dimension_numbers<[1], [0], [0], [1], [0, 0, 1, 1], [], []>} : vector<2x8xf32>, vector<8x128xf32>, vector<2x128xf32> -> vector<2x128xf32>
      %c0_17 = arith.constant 0 : index
      %c0_18 = arith.constant 0 : index
      %33 = vector.load %arg4[%c0_17, %c0_18] : memref<1x128xf32, #tpu.memory_space<vmem>>, vector<1x128xf32>
      %34 = vector.broadcast %33 : vector<1x128xf32> to vector<2x128xf32>
      %35 = arith.addf %32, %34 : vector<2x128xf32>
      %c0_19 = arith.constant 0 : index
      %c0_20 = arith.constant 0 : index
      %36 = vector.load %arg5[%c0_19, %c0_20] : memref<128x128xf32, #tpu.memory_space<vmem>>, vector<128x128xf32>
      %cst_21 = arith.constant dense<0.000000e+00> : vector<2x128xf32>
      %37 = tpu.matmul %35, %36, %cst_21 {dimension_numbers = #tpu.dot_dimension_numbers<[1], [0], [0], [1], [0, 0, 1, 1], [], []>} : vector<2x128xf32>, vector<128x128xf32>, vector<2x128xf32> -> vector<2x128xf32>
      %c0_22 = arith.constant 0 : index
      %c0_23 = arith.constant 0 : index
      %38 = vector.load %arg6[%c0_22, %c0_23] : memref<1x128xf32, #tpu.memory_space<vmem>>, vector<1x128xf32>
      %39 = vector.broadcast %38 : vector<1x128xf32> to vector<2x128xf32>
      %40 = arith.addf %37, %39 : vector<2x128xf32>
      %41 = arith.negf %40 : vector<2x128xf32>
      %42 = math.exp %41 : vector<2x128xf32>
      %cst_24 = arith.constant 1.000000e+00 : f32
      %43 = vector.broadcast %cst_24 : f32 to vector<2x128xf32>
      %44 = arith.addf %43, %42 : vector<2x128xf32>
      %45 = arith.divf %43, %44 : vector<2x128xf32>
      %c0_25 = arith.constant 0 : index
      %c0_26 = arith.constant 0 : index
      %46 = vector.load %arg7[%c0_25, %c0_26] : memref<2x128xf32, #tpu.memory_space<vmem>>, vector<2x128xf32>
      tpu.vector_store %arg7[%c0_25, %c0_26], %45 {strides = array<i32>} : memref<2x128xf32, #tpu.memory_space<vmem>>, vector<2x128xf32>,
    } else {
    }
    return
  }
  func.func @transform_0(%arg0: i32, %arg1: i32) -> (i32, i32) {
    %c0_i32 = arith.constant 0 : i32
    return %arg0, %arg1 : i32, i32
  }
  func.func @transform_1(%arg0: i32, %arg1: i32) -> (i32, i32) {
    %c0_i32 = arith.constant 0 : i32
    %c0_i32_0 = arith.constant 0 : i32
    %c0_i32_1 = arith.constant 0 : i32
    return %c0_i32, %c0_i32_0 : i32, i32
  }
  func.func @transform_2(%arg0: i32, %arg1: i32) -> (i32, i32) {
    %c0_i32 = arith.constant 0 : i32
    %c0_i32_0 = arith.constant 0 : i32
    %c0_i32_1 = arith.constant 0 : i32
    return %c0_i32, %c0_i32_0 : i32, i32
  }
  func.func @transform_3(%arg0: i32, %arg1: i32) -> (i32, i32) {
    %c0_i32 = arith.constant 0 : i32
    %c0_i32_0 = arith.constant 0 : i32
    %c0_i32_1 = arith.constant 0 : i32
    return %c0_i32, %c0_i32_0 : i32, i32
  }
  func.func @transform_4(%arg0: i32, %arg1: i32) -> (i32, i32) {
    %c0_i32 = arith.constant 0 : i32
    %c0_i32_0 = arith.constant 0 : i32
    %c0_i32_1 = arith.constant 0 : i32
    return %c0_i32, %c0_i32_0 : i32, i32
  }
  func.func @transform_5(%arg0: i32, %arg1: i32) -> (i32, i32) {
    %c0_i32 = arith.constant 0 : i32
    %c0_i32_0 = arith.constant 0 : i32
    return %arg0, %c0_i32 : i32, i32
  }
}

</mosaic_0001>

<bundles_post_ra>
// kernel: clap_audio_classifier_forward.1
= control target key start
LH: loop header
LB: loop body
LE: loop exit
PB: predicated region body
PF: predicated region fallthrough
CT: control target
= control target key end

     0   :  { %10 = vsyncpa [#allocation4], 0  ;;  %s723_s18 = smov 0   ;;  %s725_s19 = smov 0   ;;  %s848_s0 = inlined_call_operand.vmem [shape: f32[8,256], index: 0, kind: input, shape index: {}]   ;;  %s849_s1 = inlined_call_operand.vmem [shape: f32[8,128], index: 1, kind: input, shape index: {}]   ;;  %s850_s2 = inlined_call_operand.vmem [shape: f32[1,128], index: 2, kind: input, shape index: {}]   ;;  %s851_s3 = inlined_call_operand.vmem [shape: f32[128,128], index: 3, kind: input, shape index: {}]   ;;  %s852_s4 = inlined_call_operand.vmem [shape: f32[1,128], index: 4, kind: input, shape index: {}]   ;;  %s853_s5 = inlined_call_operand.hbm [shape: f32[2,128], index: 5, kind: output, shape index: {}]  }
   0x1   :  { %s727_s20 = smov 0  }
   0x2 LB: > { %s522_s21 = sadd.s32 4294967295, %s686_s20   ;;  %s25_s22 = sadd.s32 1, %s682_s19  ;;  %s686_s20 = sphi %s727_s20, %s16_s20   ;;  %s682_s19 = sphi %s725_s19, %s856_s19   ;;  %s678_s18 = sphi %s723_s18, %s855_s18  }
   0x3   : > { %p26_p0 = scmp.ge.s32.totalorder %s25_s22, 2  ;;  %p525_p1 = scmp.ge.s32.totalorder %s686_s20, 1 }
   0x4   : > { %p205_p2 = scmp.lt.s32.totalorder %s686_s20, 3 }
   0x5   : > { %s858_s22 = smov (%p26_p0, %s25_s22), 0 }
   0x6   : > { %p206_p3 = pnand %p525_p1, %p205_p2 }
   0x7   : > { %p233_p4 = scmp.lt.s32.totalorder (!%p206_p3), %s678_s18, 1  ;;  %p527_p5 = scmp.ne.s32.totalorder (!%p206_p3), %s678_s18, 0 }
   0x8   : > { %209 = sbr.rel (%p206_p3) target bundleno = 737 (0x2e1), region = 40 }
   0xd   : > { %s234_s23 = scalar_select %p233_p4, %s678_s18, 1 }
   0xe   : > { %242 = sbr.rel (%p527_p5) target bundleno = 21 (0x15), region = 44 }
   0xf   : > { %s526_s24 = sshll.u32 %s234_s23, 3 }
  0x10   : > { %s238_s27 = scalar_lea.vmem %s848_s0, %s526_s24 }
  0x13   : > { %vm243_vm0 = vcmask 7168   ;;  %v688_v0 = vmov 0.0  }
  0x14   : > { %244 = vst.msk [vmem:[#allocation2] sm:$0xff] %vm243_vm0, %v688_v0 }
  0x15 PF: > { %v245_v1 = vld [vmem:[%s238_s27] sm:$0xff]  ;;  %vm250_vm1 = vcmask 7168   ;;  %p528_p6 = scmp.ne.s32.totalorder %s678_s18, 1 }
  0x16   : > { %247 = vadd.xlane.f32.xlu0 %v245_v1 }
  0x1b   : > { %v246_v2 = vld [vmem:[#allocation2] sm:$0xff] }
  0x9e   : > { %255 = sbr.rel (%p528_p6) target bundleno = 722 (0x2d2), region = 48 }
  0x9f   : > { %v248_v3 = vpop.xlane.xlu0 %247 }
  0xa0   : > { %v249_v4 = vadd.f32 %v248_v3, %v246_v2 }
  0xa2   : > { %251 = vst.msk [vmem:[#allocation2] sm:$0xff] %vm250_vm1, %v249_v4 }
  0xa3   : > { %v689_v6 = vmov 0   ;;  %v690_v8 = vmov 0.0   ;;  %vm691_vm2 = vmmov 0   ;;  %v372_v9 = vld [vmem:[%s851_s3 + $0x78] sm:$0xff]  ;;  %v371_v10 = vld [vmem:[%s851_s3 + $0x70] sm:$0xff]  ;;  %v370_v11 = vld [vmem:[%s851_s3 + $0x68] sm:$0xff]  ;;  %v265_v23 = vlaneseq }
  0xa4   : > { %631 = vset.pattern.permute.xlu0 %v689_v6  ;;  %556 = vmatprep.subr.mxu0 %v690_v8  ;;  %v369_v12 = vld [vmem:[%s851_s3 + $0x60] sm:$0xff]  ;;  %v368_v13 = vld [vmem:[%s851_s3 + $0x58] sm:$0xff]  ;;  %v367_v14 = vld [vmem:[%s851_s3 + $0x50] sm:$0xff]  ;;  %vm283_vm6 = vcmask 64512  }
  0xa5   : > { %558 = vmatprep.mubr.msk.f32.mxu0 %vm691_vm2, %v690_v8  ;;  %561 = vmatprep.subr.mxu1 %v690_v8  ;;  %v366_v15 = vld [vmem:[%s851_s3 + $0x48] sm:$0xff]  ;;  %v365_v16 = vld [vmem:[%s851_s3 + $0x40] sm:$0xff]  ;;  %v364_v17 = vld [vmem:[%s851_s3 + $0x38] sm:$0xff]  ;;  %v266_v24 = vshrl.u32 %v265_v23, 7  ;;  %v268_v26 = vand.u32 127, %v265_v23 }
  0xa6   : > { %562 = vmatpush3.msra.mxu1 %v372_v9  ;;  %593 = vmatprep.mubr.msk.f32.mxu1 %vm691_vm2, %v690_v8  ;;  %v363_v18 = vld [vmem:[%s851_s3 + $0x30] sm:$0xff]  ;;  %v362_v19 = vld [vmem:[%s851_s3 + $0x28] sm:$0xff]  ;;  %v361_v20 = vld [vmem:[%s851_s3 + $0x20] sm:$0xff] }
  0xa7   : > { %563 = vmatprep.subr.mxu1 %v690_v8  ;;  %v360_v21 = vld [vmem:[%s851_s3 + $0x18] sm:$0xff]  ;;  %v359_v22 = vld [vmem:[%s851_s3 + $0x10] sm:$0xff]  ;;  %v271_v25 = vadd.s32 1, %v266_v24  ;;  %v269_v27 = vmul.u32 4, %v266_v24  ;;  %v258_v29 = vld [vmem:[%s849_s1] sm:$0xff] }
  0xa8   : > { %564 = vmatpush3.msra.mxu1 %v371_v10  ;;  %v358_v33 = vld [vmem:[%s851_s3 + $0x8] sm:$0xff]  ;;  %v357_v34 = vld [vmem:[%s851_s3] sm:$0xff] }
  0xa9   : > { %v256_v5 = vld [vmem:[#allocation2] sm:$0xff]  ;;  %565 = vmatprep.subr.mxu1 %v690_v8  ;;  %v272_v28 = vmul.u32 4, %v271_v25  ;;  %vm270_vm3 = vcmp.ge.s32.totalorder %v268_v26, %v269_v27 }
  0xaa   : > { %v257_v7 = vmul.f32 0.00390625, %v256_v5  ;;  %566 = vmatpush3.msra.mxu1 %v370_v11  ;;  %v529_v35 = vld [vmem:[%s850_s2] ss:$0 sm:$0xff] }
  0xab   : > { %567 = vmatprep.subr.mxu1 %v690_v8  ;;  %vm273_vm4 = vcmp.lt.s32.totalorder %v268_v26, %v272_v28  ;;  %v531_v39 = vld [vmem:[%s852_s4] ss:$0 sm:$0xff] }
  0xac   : > { %261 = vperm.xlu0 %631, %v257_v7   ;;  %568 = vmatpush3.msra.mxu1 %v369_v12  ;;  %vm274_vm5 = vmand %vm270_vm3, %vm273_vm4 }
  0xad   : > { %569 = vmatprep.subr.mxu1 %v690_v8  ;;  %v275_v32 = vsel %vm274_vm5, 1.0, %v690_v8 }
  0xae   : > { %570 = vmatpush3.msra.mxu1 %v368_v13 }
  0xaf   : > { %571 = vmatprep.subr.mxu1 %v690_v8 }
  0xb0   : > { %572 = vmatpush3.msra.mxu1 %v367_v14 }
  0xb1   : > { %573 = vmatprep.subr.mxu1 %v690_v8 }
  0xb2   : > { %574 = vmatpush3.msra.mxu1 %v366_v15 }
  0xb3   : > { %575 = vmatprep.subr.mxu1 %v690_v8 }
  0xb4   : > { %576 = vmatpush3.msra.mxu1 %v365_v16 }
  0xb5   : > { %577 = vmatprep.subr.mxu1 %v690_v8 }
  0xb6   : > { %578 = vmatpush3.msra.mxu1 %v364_v17 }
  0xb7   : > { %579 = vmatprep.subr.mxu1 %v690_v8 }
  0xb8   : > { %580 = vmatpush3.msra.mxu1 %v363_v18 }
  0xb9   : > { %581 = vmatprep.subr.mxu1 %v690_v8 }
  0xba   : > { %582 = vmatpush3.msra.mxu1 %v362_v19 }
  0xbb   : > { %583 = vmatprep.subr.mxu1 %v690_v8 }
  0xbc   : > { %584 = vmatpush3.msra.mxu1 %v361_v20 }
  0xbd   : > { %585 = vmatprep.subr.mxu1 %v690_v8 }
  0xbe   : > { %586 = vmatpush3.msra.mxu1 %v360_v21 }
  0xbf   : > { %587 = vmatprep.subr.mxu1 %v690_v8 }
  0xc0   : > { %588 = vmatpush3.msra.mxu1 %v359_v22 }
  0xc1   : > { %589 = vmatprep.subr.mxu1 %v690_v8 }
  0xc2   : > { %590 = vmatpush3.msra.mxu1 %v358_v33 }
  0xc3   : > { %591 = vmatprep.subr.mxu1 %v690_v8 }
  0xc4   : > { %592 = vmatpush3.msra.mxu1 %v357_v34 }
 0x127   : > { %v262_v30 = vpop.permute.xlu0 %261 }
 0x128   : > { %v264_v31 = vmul.f32 %v262_v30, %v258_v29 }
 0x12a   : > { %557 = vmatpush3.msra.mxu0 %v264_v31 }
 0x12b   : > { %559 = vmatmul.mubr.msk.f32.vlgmr.msra.gmra.mxu0 %vm283_vm6, %v275_v32 }
 0x1eb   : > { %v353_v36 = vpop.f32.mrf.mxu0 }
 0x1ec   : > { %v354_v37 = vadd.f32 %v529_v35, %v353_v36 }
 0x1ed   : > { %v560_v38 = vpop.f32.mrf.mxu0 }
 0x1ee   : > { %594 = vmatmul.mubr.f32.vlgmr.msra.gmra.mxu1 %v354_v37 }
 0x2ae   : > { %v446_v40 = vpop.f32.mrf.mxu1 }
 0x2af   : > { %v447_v41 = vadd.f32 %v531_v39, %v446_v40 }
 0x2b0   : > { %v595_v42 = vpop.f32.mrf.mxu1 }
 0x2b1   : > { %v532_v43 = vmul.f32 -1.442695, %v447_v41 }
 0x2b3   : > { %632 = vpow2.f32 %v532_v43 }
 0x2c0   : > { %v633_v44 = vpop.eup %632 }
 0x2c1   : > { %v453_v45 = vadd.f32 1.0, %v633_v44 }
 0x2c3   : > { %634 = vrcp.f32 %v453_v45 }
 0x2d0   : > { %v635_v46 = vpop.eup %634 }
 0x2d1   : > { %456 = vst [vmem:[#allocation3] sm:$0x3] %v635_v46 }
 0x2d2 PF: > { %p824_p7 = scmp.eq.s32.totalorder %s522_s21, 1  ;;  %s692_s25 = smov [#allocation3]  }
 0x2d3   : > { %s466_s26 = sshll.u32 %s692_s25, 4  ;;  %s467_s26 = int_to_ptr.vmem [resolvable:$true] %s466_s26 }
 0x2d4   : > { %s636_s27 = scalar_lea.vmem %s467_s26, 32  ;;  %p643_p11 = scmp.lt.s32.totalorder %s467_s26, %s467_s26 }
 0x2d5   : > { %p637_p8 = scmp.ne.s32.totalorder %s467_s26, %s636_s27  ;;  %p644_p12 = scmp.lt.s32.totalorder %s636_s27, %s636_s27 }
 0x2d7   : > { %p638_p9 = pnand %p637_p8, %p824_p7  ;;  %p645_p13 = por %p644_p12, %p643_p11 }
 0x2d9   : > { %p639_p10 = pneg %p638_p9 }
 0x2db   : > { %p646_p0 = pnand %p645_p13, %p639_p10 }
 0x2dd   : > { %649 = shalt.err (!%p646_p0)
}
 0x2de   : > { %597 = dma.vmem_to_hbm [thread:$0]  (%p824_p7), %s467_s26, 32, %s853_s5, [#allocation4]  }
 0x2df   : > { %673 = dma.done.wait (%p824_p7), [#allocation4], 32  }
 0x2e0   : > { %675 = vsyncadd (%p824_p7), [#allocation4], 4294967264 }
 0x2e1 PF: > { %s16_s20 = sadd.s32 1, %s686_s20   ;;  %s855_s18 = smov %s682_s19 }
 0x2e2   : > { %p13_p1 = scmp.ge.s32.totalorder %s16_s20, 4   ;;  %s856_s19 = smov %s858_s22 }
 0x2e4   :  { %15 = sbr.rel (!%p13_p1) target bundleno = 2 (0x2), region = 76 }
 0x2e9   :  { %479 = vsyncpa [#allocation4], 1 }
 0x2ea   :  { %481 = vsyncpa [#allocation4 + $0x1], 1 }

</bundles_post_ra>
